<compile_context>
chip_gen: v7x
topology: tpu7x:2x2x1
jax: 0.10.0
libtpu: 0.0.40
codegen_flags: <defaults>
</compile_context>

<pallas_src>
import functools

import jax
import jax.numpy as jnp
from jax import lax
from jax.experimental import pallas as pl
from jax.experimental.pallas import tpu as pltpu


def _convlstm_kernel(cols_ref, w_ref, b_ref, c_ref,
                     newh_ref, newc_ref, o_ref, *, HC, Bblk):
    # cols_ref: (Bblk, K*K*Ct, H*W)  bf16  im2col patches, channel-major
    # w_ref   : (4*HC, K*K*Ct)       bf16
    # b_ref   : (4*HC, 1)            f32
    # c_ref   : (Bblk, HC, H*W)      f32
    w = w_ref[...]
    bias = b_ref[...]
    for b in range(Bblk):  # small static unroll over the batch block
        # Single fused MXU matmul: (4*HC, KKCt) @ (KKCt, HW) -> (4*HC, HW).
        a = jnp.dot(w, cols_ref[b], preferred_element_type=jnp.float32) + bias

        i = jax.nn.sigmoid(a[0 * HC:1 * HC])      # (HC, HW), lane-dense
        f = jax.nn.sigmoid(a[1 * HC:2 * HC])
        o = jax.nn.sigmoid(a[2 * HC:3 * HC])
        g = jnp.tanh(a[3 * HC:4 * HC])

        c_old = c_ref[b]
        new_c = f * c_old + i * g
        new_h = o * jnp.tanh(new_c)

        newh_ref[b] = new_h.astype(newh_ref.dtype)
        newc_ref[b] = new_c.astype(newc_ref.dtype)
        o_ref[b] = o.astype(o_ref.dtype)


def _pick_batch_block(B, cap=8):
    """Largest divisor of B that still leaves >= 2 grid blocks (when B >= 2)."""
    target = max(1, min(cap, B // 2))
    for bb in range(target, 0, -1):
        if B % bb == 0:
            return bb
    return 1


def conv_lstm_cell(x_nchw, h_nchw, c_nchw, w_oikk, b_o, *, kernel_size,
                   compute_dtype=jnp.bfloat16):
    """Matches ConvLSTMCell.forward(input, h, c) -> (new_h, new_c, o), NCHW."""
    B, Ci, H, W = x_nchw.shape
    HC = h_nchw.shape[1]
    K = kernel_size
    assert K % 2 == 1, "ConvLSTMCell SAME padding requires odd kernel_size"
    pad = (K - 1) // 2
    Ct = Ci + HC
    HW = H * W
    KKCt = K * K * Ct

    # --- wrapper glue on flattened NCHW (no layout transposes) --------------
    comb = jnp.concatenate([x_nchw, h_nchw], axis=1)               # (B,Ct,H,W)
    comb_p = jnp.pad(comb, ((0, 0), (0, 0), (pad, pad), (pad, pad)))
    # im2col, channel-major: cols[b, (dy*K+dx)*Ct + ic, y*W + x]
    patches = [comb_p[:, :, dy:dy + H, dx:dx + W]
               for dy in range(K) for dx in range(K)]
    cols = jnp.stack(patches, axis=1).reshape(B, KKCt, HW).astype(compute_dtype)

    # PyTorch conv weight (4*HC, Ct, K, K) -> (4*HC, K*K*Ct) with the same
    # (dy, dx, ic) ordering as the im2col rows.
    w_mat = jnp.transpose(w_oikk, (0, 2, 3, 1)).reshape(4 * HC, KKCt)
    w_mat = w_mat.astype(compute_dtype)
    bias = b_o.reshape(4 * HC, 1).astype(jnp.float32)

    c_flat = c_nchw.reshape(B, HC, HW).astype(jnp.float32)

    Bblk = _pick_batch_block(B)
    G = B // Bblk

    kernel = functools.partial(_convlstm_kernel, HC=HC, Bblk=Bblk)
    out_sd = jax.ShapeDtypeStruct((B, HC, HW), jnp.float32)

    new_h, new_c, o = pl.pallas_call(
        kernel,
        out_shape=(out_sd, out_sd, out_sd),
        grid_spec=pltpu.PrefetchScalarGridSpec(
            num_scalar_prefetch=0,
            grid=(G,),
            in_specs=[
                pl.BlockSpec((Bblk, KKCt, HW), lambda g: (g, 0, 0)),
                pl.BlockSpec((4 * HC, KKCt), lambda g: (0, 0)),   # resident
                pl.BlockSpec((4 * HC, 1), lambda g: (0, 0)),      # resident
                pl.BlockSpec((Bblk, HC, HW), lambda g: (g, 0, 0)),
            ],
            out_specs=[
                pl.BlockSpec((Bblk, HC, HW), lambda g: (g, 0, 0)),
                pl.BlockSpec((Bblk, HC, HW), lambda g: (g, 0, 0)),
                pl.BlockSpec((Bblk, HC, HW), lambda g: (g, 0, 0)),
            ],
        ),
        compiler_params=pltpu.CompilerParams(
            dimension_semantics=("parallel",)),
    )(cols, w_mat, bias, c_flat)

    shp = (B, HC, H, W)  # free reshapes back to NCHW
    return new_h.reshape(shp), new_c.reshape(shp), o.reshape(shp)


def _reference(x, h, c, w, b, kernel_size):
    """Pure-JAX NCHW reference matching the PyTorch module (f32)."""
    pad = (kernel_size - 1) // 2
    comb = jnp.concatenate([x, h], axis=1)
    A = lax.conv_general_dilated(
        comb, w, window_strides=(1, 1),
        padding=((pad, pad), (pad, pad)),
        dimension_numbers=("NCHW", "OIHW", "NCHW"))
    A = A + b[None, :, None, None]
    HC = h.shape[1]
    ai, af, ao, ag = jnp.split(A, 4, axis=1)
    i = jax.nn.sigmoid(ai)
    f = jax.nn.sigmoid(af)
    o = jax.nn.sigmoid(ao)
    g = jnp.tanh(ag)
    new_c = f * c + i * g
    new_h = o * jnp.tanh(new_c)
    return new_h, new_c, o


if __name__ == "__main__":
    # Module hyperparams (hidden_channels must be even, kernel_size odd).
    B, Ci, HC, K = 2, 4, 8, 3
    H = W = 16

    key = jax.random.PRNGKey(0)
    kx, kh, kc, kw = jax.random.split(key, 4)

    x = jax.random.normal(kx, (B, Ci, H, W), jnp.float32)
    h = jax.random.normal(kh, (B, HC, H, W), jnp.float32)
    c = jax.random.normal(kc, (B, HC, H, W), jnp.float32)

    # Deterministic init mirroring _initialize_weights: normal(std=0.01), zero bias.
    w = 0.01 * jax.random.normal(kw, (4 * HC, Ci + HC, K, K), jnp.float32)
    b = jnp.zeros((4 * HC,), jnp.float32)

    fwd = jax.jit(functools.partial(conv_lstm_cell, kernel_size=K))
    new_h, new_c, o = fwd(x, h, c, w, b)
    jax.block_until_ready((new_h, new_c, o))

    rh, rc, ro = _reference(x, h, c, w, b, K)
    # bf16 matmul operands -> relaxed tolerance vs the f32 reference.
    assert jnp.allclose(new_h, rh, atol=1e-2, rtol=1e-2)
    assert jnp.allclose(new_c, rc, atol=1e-2, rtol=1e-2)
    assert jnp.allclose(o, ro, atol=1e-2, rtol=1e-2)

    print("KERNEL_OK")
</pallas_src>

<mosaic_0001>
module attributes {stable_mosaic.version = 11 : i64} {
  func.func @_convlstm_kernel(%arg0: i32, %arg1: memref<1x108x256xbf16, #tpu.memory_space<vmem>>, %arg2: memref<32x108xbf16, #tpu.memory_space<vmem>>, %arg3: memref<32x1xf32, #tpu.memory_space<vmem>>, %arg4: memref<1x8x256xf32, #tpu.memory_space<vmem>>, %arg5: memref<1x8x256xf32, #tpu.memory_space<vmem>>, %arg6: memref<1x8x256xf32, #tpu.memory_space<vmem>>, %arg7: memref<1x8x256xf32, #tpu.memory_space<vmem>>) attributes {dimension_semantics = [#tpu.dimension_semantics<parallel>], iteration_bounds = array<i64: 2>, scalar_prefetch = 0 : i64, scratch_operands = 0 : i64, tpu.core_type = #tpu.core_type<tc>, window_params = [{transform_indices = @transform_0, window_bounds = array<i64: 1, 108, 256>}, {pipeline_mode = #tpu.pipeline_mode<synchronous>, transform_indices = @transform_1, window_bounds = array<i64: 32, 108>}, {pipeline_mode = #tpu.pipeline_mode<synchronous>, transform_indices = @transform_2, window_bounds = array<i64: 32, 1>}, {transform_indices = @transform_3, window_bounds = array<i64: 1, 8, 256>}, {transform_indices = @transform_4, window_bounds = array<i64: 1, 8, 256>}, {transform_indices = @transform_5, window_bounds = array<i64: 1, 8, 256>}, {transform_indices = @transform_6, window_bounds = array<i64: 1, 8, 256>}]} {
    %c0 = arith.constant 0 : index
    %c0_0 = arith.constant 0 : index
    %0 = vector.load %arg2[%c0, %c0_0] : memref<32x108xbf16, #tpu.memory_space<vmem>>, vector<32x108xbf16>
    %c0_1 = arith.constant 0 : index
    %c0_2 = arith.constant 0 : index
    %1 = vector.load %arg3[%c0_1, %c0_2] : memref<32x1xf32, #tpu.memory_space<vmem>>, vector<32x1xf32>
    %c0_3 = arith.constant 0 : index
    %c0_4 = arith.constant 0 : index
    %c0_5 = arith.constant 0 : index
    %2 = vector.load %arg1[%c0_3, %c0_4, %c0_5] : memref<1x108x256xbf16, #tpu.memory_space<vmem>>, vector<1x108x256xbf16>
    %3 = vector.shape_cast %2 : vector<1x108x256xbf16> to vector<108x256xbf16>
    %cst = arith.constant dense<0.000000e+00> : vector<32x256xf32>
    %4 = tpu.matmul %0, %3, %cst {dimension_numbers = #tpu.dot_dimension_numbers<[1], [0], [0], [1], [0, 0, 1, 1], [], []>} : vector<32x108xbf16>, vector<108x256xbf16>, vector<32x256xf32> -> vector<32x256xf32>
    %5 = vector.broadcast %1 : vector<32x1xf32> to vector<32x256xf32>
    %6 = arith.addf %4, %5 : vector<32x256xf32>
    %7 = vector.extract_strided_slice %6 {offsets = [0, 0], sizes = [8, 256], strides = [1, 1]} : vector<32x256xf32> to vector<8x256xf32>
    %8 = arith.negf %7 : vector<8x256xf32>
    %9 = math.exp %8 : vector<8x256xf32>
    %cst_6 = arith.constant 1.000000e+00 : f32
    %10 = vector.broadcast %cst_6 : f32 to vector<8x256xf32>
    %11 = arith.addf %10, %9 : vector<8x256xf32>
    %12 = arith.divf %10, %11 : vector<8x256xf32>
    %13 = vector.extract_strided_slice %6 {offsets = [8, 0], sizes = [8, 256], strides = [1, 1]} : vector<32x256xf32> to vector<8x256xf32>
    %14 = arith.negf %13 : vector<8x256xf32>
    %15 = math.exp %14 : vector<8x256xf32>
    %cst_7 = arith.constant 1.000000e+00 : f32
    %16 = vector.broadcast %cst_7 : f32 to vector<8x256xf32>
    %17 = arith.addf %16, %15 : vector<8x256xf32>
    %18 = arith.divf %16, %17 : vector<8x256xf32>
    %19 = vector.extract_strided_slice %6 {offsets = [16, 0], sizes = [8, 256], strides = [1, 1]} : vector<32x256xf32> to vector<8x256xf32>
    %20 = arith.negf %19 : vector<8x256xf32>
    %21 = math.exp %20 : vector<8x256xf32>
    %cst_8 = arith.constant 1.000000e+00 : f32
    %22 = vector.broadcast %cst_8 : f32 to vector<8x256xf32>
    %23 = arith.addf %22, %21 : vector<8x256xf32>
    %24 = arith.divf %22, %23 : vector<8x256xf32>
    %25 = vector.extract_strided_slice %6 {offsets = [24, 0], sizes = [8, 256], strides = [1, 1]} : vector<32x256xf32> to vector<8x256xf32>
    %26 = math.tanh %25 : vector<8x256xf32>
    %c0_9 = arith.constant 0 : index
    %c0_10 = arith.constant 0 : index
    %c0_11 = arith.constant 0 : index
    %27 = vector.load %arg4[%c0_9, %c0_10, %c0_11] : memref<1x8x256xf32, #tpu.memory_space<vmem>>, vector<1x8x256xf32>
    %28 = vector.shape_cast %27 : vector<1x8x256xf32> to vector<8x256xf32>
    %29 = arith.mulf %18, %28 : vector<8x256xf32>
    %30 = arith.mulf %12, %26 : vector<8x256xf32>
    %31 = arith.addf %29, %30 : vector<8x256xf32>
    %32 = math.tanh %31 : vector<8x256xf32>
    %33 = arith.mulf %24, %32 : vector<8x256xf32>
    %c0_12 = arith.constant 0 : index
    %c0_13 = arith.constant 0 : index
    %c0_14 = arith.constant 0 : index
    %34 = vector.load %arg5[%c0_12, %c0_13, %c0_14] : memref<1x8x256xf32, #tpu.memory_space<vmem>>, vector<1x8x256xf32>
    %35 = vector.shape_cast %34 : vector<1x8x256xf32> to vector<8x256xf32>
    %36 = vector.shape_cast %33 : vector<8x256xf32> to vector<1x8x256xf32>
    tpu.vector_store %arg5[%c0_12, %c0_13, %c0_14], %36 {strides = array<i32>} : memref<1x8x256xf32, #tpu.memory_space<vmem>>, vector<1x8x256xf32>,
    %c0_15 = arith.constant 0 : index
    %c0_16 = arith.constant 0 : index
    %c0_17 = arith.constant 0 : index
    %37 = vector.load %arg6[%c0_15, %c0_16, %c0_17] : memref<1x8x256xf32, #tpu.memory_space<vmem>>, vector<1x8x256xf32>
    %38 = vector.shape_cast %37 : vector<1x8x256xf32> to vector<8x256xf32>
    %39 = vector.shape_cast %31 : vector<8x256xf32> to vector<1x8x256xf32>
    tpu.vector_store %arg6[%c0_15, %c0_16, %c0_17], %39 {strides = array<i32>} : memref<1x8x256xf32, #tpu.memory_space<vmem>>, vector<1x8x256xf32>,
    %c0_18 = arith.constant 0 : index
    %c0_19 = arith.constant 0 : index
    %c0_20 = arith.constant 0 : index
    %40 = vector.load %arg7[%c0_18, %c0_19, %c0_20] : memref<1x8x256xf32, #tpu.memory_space<vmem>>, vector<1x8x256xf32>
    %41 = vector.shape_cast %40 : vector<1x8x256xf32> to vector<8x256xf32>
    %42 = vector.shape_cast %24 : vector<8x256xf32> to vector<1x8x256xf32>
    tpu.vector_store %arg7[%c0_18, %c0_19, %c0_20], %42 {strides = array<i32>} : memref<1x8x256xf32, #tpu.memory_space<vmem>>, vector<1x8x256xf32>,
    return
  }
  func.func @transform_0(%arg0: i32) -> (i32, i32, i32) {
    %c0_i32 = arith.constant 0 : i32
    %c0_i32_0 = arith.constant 0 : i32
    %c0_i32_1 = arith.constant 0 : i32
    return %arg0, %c0_i32, %c0_i32_0 : i32, i32, i32
  }
  func.func @transform_1(%arg0: i32) -> (i32, i32) {
    %c0_i32 = arith.constant 0 : i32
    %c0_i32_0 = arith.constant 0 : i32
    %c0_i32_1 = arith.constant 0 : i32
    return %c0_i32, %c0_i32_0 : i32, i32
  }
  func.func @transform_2(%arg0: i32) -> (i32, i32) {
    %c0_i32 = arith.constant 0 : i32
    %c0_i32_0 = arith.constant 0 : i32
    %c0_i32_1 = arith.constant 0 : i32
    return %c0_i32, %c0_i32_0 : i32, i32
  }
  func.func @transform_3(%arg0: i32) -> (i32, i32, i32) {
    %c0_i32 = arith.constant 0 : i32
    %c0_i32_0 = arith.constant 0 : i32
    %c0_i32_1 = arith.constant 0 : i32
    return %arg0, %c0_i32, %c0_i32_0 : i32, i32, i32
  }
  func.func @transform_4(%arg0: i32) -> (i32, i32, i32) {
    %c0_i32 = arith.constant 0 : i32
    %c0_i32_0 = arith.constant 0 : i32
    %c0_i32_1 = arith.constant 0 : i32
    return %arg0, %c0_i32, %c0_i32_0 : i32, i32, i32
  }
  func.func @transform_5(%arg0: i32) -> (i32, i32, i32) {
    %c0_i32 = arith.constant 0 : i32
    %c0_i32_0 = arith.constant 0 : i32
    %c0_i32_1 = arith.constant 0 : i32
    return %arg0, %c0_i32, %c0_i32_0 : i32, i32, i32
  }
  func.func @transform_6(%arg0: i32) -> (i32, i32, i32) {
    %c0_i32 = arith.constant 0 : i32
    %c0_i32_0 = arith.constant 0 : i32
    %c0_i32_1 = arith.constant 0 : i32
    return %arg0, %c0_i32, %c0_i32_0 : i32, i32, i32
  }
}

</mosaic_0001>

<bundles_post_ra>
// kernel: conv_lstm_cell.1
= control target key start
LH: loop header
LB: loop body
LE: loop exit
PB: predicated region body
PF: predicated region fallthrough
CT: control target
= control target key end

     0   :  { %s844_s21 = smov 0   ;;  %s914_s0 = inlined_call_operand.vmem [shape: bf16[2,108,256], index: 0, kind: input, shape index: {}]   ;;  %s915_s1 = inlined_call_operand.vmem [shape: bf16[32,108], index: 1, kind: input, shape index: {}]   ;;  %s916_s2 = inlined_call_operand.vmem [shape: f32[32,1], index: 2, kind: input, shape index: {}]   ;;  %s917_s3 = inlined_call_operand.vmem [shape: f32[2,8,256], index: 3, kind: input, shape index: {}]   ;;  %s918_s4 = inlined_call_operand.vmem [shape: f32[2,8,256], index: 4, kind: output, shape index: {0}]   ;;  %s919_s5 = inlined_call_operand.vmem [shape: f32[2,8,256], index: 5, kind: output, shape index: {1}]   ;;  %s920_s6 = inlined_call_operand.vmem [shape: f32[2,8,256], index: 6, kind: output, shape index: {2}]  }
   0x1 LB: > { %s674_s22 = sadd.s32 4294967295, %s806_s21   ;;  %p678_p0 = scmp.ge.s32.totalorder %s806_s21, 1  ;;  %s806_s21 = sphi %s844_s21, %s17_s21  }
   0x2   : > { %p227_p1 = scmp.lt.s32.totalorder %s806_s21, 3 }
   0x4   : > { %p228_p2 = pnand %p678_p0, %p227_p1 }
   0x5   : > { %p272_p3 = scmp.lt.s32.totalorder (!%p228_p2), %s674_s22, 1  ;;  %v808_v0 = vmov (!%p228_p2), 0   ;;  %v302_v1 = vld [vmem:[%s916_s2] sm:$0xff] (!%p228_p2)  ;;  %v304_v2 = vld [vmem:[%s916_s2 + $0x10] sm:$0xff] (!%p228_p2)  ;;  %v303_v3 = vld [vmem:[%s916_s2 + $0x8] sm:$0xff] (!%p228_p2)  ;;  %vm425_vm0 = vcmask (!%p228_p2), 1045504  }
   0x6   : > { %231 = sbr.rel (%p228_p2) target bundleno = 307 (0x133), region = 36  ;;  %464 = vmatprep.mubr.bf16.mxu0 (!%p228_p2), %v808_v0  ;;  %474 = vmatprep.mubr.bf16.mxu1 (!%p228_p2), %v808_v0  ;;  %v305_v4 = vld [vmem:[%s916_s2 + $0x18] sm:$0xff] (!%p228_p2)  ;;  %v766_v20 = vld [vmem:[%s915_s1] sm:$0xff] (!%p228_p2)   ;;  %v767_v21 = vld [vmem:[%s915_s1 + $0x8] sm:$0xff] (!%p228_p2)   ;;  %vm418_vm1 = vcmask (!%p228_p2), 883712  }
   0x7   : > { %743 = vset.pattern.permute.xlu0 (!%p228_p2), %v808_v0  ;;  %744 = vset.pattern.permute.xlu1 (!%p228_p2), %v808_v0 }
   0x8   : > { %322 = vperm.xlu0 (!%p228_p2), %743, %v302_v1   ;;  %332 = vperm.xlu1 (!%p228_p2), %744, %v304_v2  }
   0xc   : > { %327 = vperm.xlu0 (!%p228_p2), %743, %v303_v3   ;;  %337 = vperm.xlu1 (!%p228_p2), %744, %v305_v4  }
   0xd   : > { %s922_s22 = smov (!%p272_p3, %s674_s22), 1 }
   0xe   : > { %s733_s27 = smul.u32 112, %s922_s22  ;;  %s893_s15 = sshll.u32 %s922_s22, 4 }
   0xf   : > { %s281_s18 = scalar_lea.vmem %s917_s3, %s893_s15  ;;  %s296_s22 = scalar_lea.vmem %s920_s6, %s893_s15 }
  0x10   : > { %s870_s10 = scalar_lea.vmem %s914_s0, %s733_s27  ;;  %v523_v63 = vld [vmem:[%s281_s18] sm:$0xff]  ;;  %v524_v1 = vld [vmem:[%s281_s18 + $0x8] sm:$0xff]  ;;  %s291_s25 = scalar_lea.vmem %s919_s5, %s893_s15 }
  0x11   : > { %v745_v5 = vld [vmem:[%s870_s10 + $0x4] ss:$8 sps:$4 sm:$0xff]   ;;  %v747_v6 = vld [vmem:[%s870_s10] ss:$8 sps:$4 sm:$0xff]   ;;  %v748_v7 = vld [vmem:[%s870_s10 + $0x14] ss:$8 sps:$4 sm:$0xff]   ;;  %s286_s28 = scalar_lea.vmem %s918_s4, %s893_s15 }
  0x12   : > { %432 = vmatprep.subr.bf16.mxu0 %v745_v5  ;;  %719 = vmatprep.subr.bf16.mxu1 %v745_v5  ;;  %v750_v8 = vld [vmem:[%s870_s10 + $0x10] ss:$8 sps:$4 sm:$0xff]   ;;  %v751_v9 = vld [vmem:[%s870_s10 + $0x24] ss:$8 sps:$4 sm:$0xff]   ;;  %v753_v10 = vld [vmem:[%s870_s10 + $0x20] ss:$8 sps:$4 sm:$0xff]  }
  0x13   : > { %433 = vmatpush1.bf16.msra.mxu0 %v747_v6  ;;  %726 = vmatpush1.bf16.msra.mxu1 %v747_v6  ;;  %v754_v11 = vld [vmem:[%s870_s10 + $0x34] ss:$8 sps:$4 sm:$0xff]   ;;  %v756_v12 = vld [vmem:[%s870_s10 + $0x30] ss:$8 sps:$4 sm:$0xff]   ;;  %v757_v13 = vld [vmem:[%s870_s10 + $0x44] ss:$8 sps:$4 sm:$0xff]  }
  0x14   : > { %434 = vmatprep.subr.bf16.mxu0 %v748_v7  ;;  %720 = vmatprep.subr.bf16.mxu1 %v748_v7  ;;  %v759_v14 = vld [vmem:[%s870_s10 + $0x40] ss:$8 sps:$4 sm:$0xff]   ;;  %v760_v15 = vld [vmem:[%s870_s10 + $0x54] ss:$8 sps:$4 sm:$0xff]   ;;  %v762_v16 = vld [vmem:[%s870_s10 + $0x50] ss:$8 sps:$4 sm:$0xff]  }
  0x15   : > { %v763_v17 = vld [vmem:[%s870_s10 + $0x64] ss:$8 sps:$4 sm:$0x3f]   ;;  %v765_v18 = vld [vmem:[%s870_s10 + $0x60] ss:$8 sps:$4 sm:$0x3f]  }
  0x16   : > { %v427_v19 = vsel %vm425_vm0, %v765_v18, 0 }
  0x17   : > { %435 = vmatpush1.bf16.msra.mxu0 %v750_v8  ;;  %727 = vmatpush1.bf16.msra.mxu1 %v750_v8 }
  0x18   : > { %436 = vmatprep.subr.bf16.mxu0 %v751_v9  ;;  %721 = vmatprep.subr.bf16.mxu1 %v751_v9 }
  0x1b   : > { %437 = vmatpush1.bf16.msra.mxu0 %v753_v10  ;;  %728 = vmatpush1.bf16.msra.mxu1 %v753_v10 }
  0x1c   : > { %438 = vmatprep.subr.bf16.mxu0 %v754_v11  ;;  %722 = vmatprep.subr.bf16.mxu1 %v754_v11 }
  0x1f   : > { %439 = vmatpush1.bf16.msra.mxu0 %v756_v12  ;;  %729 = vmatpush1.bf16.msra.mxu1 %v756_v12 }
  0x20   : > { %440 = vmatprep.subr.bf16.mxu0 %v757_v13  ;;  %723 = vmatprep.subr.bf16.mxu1 %v757_v13 }
  0x23   : > { %441 = vmatpush1.bf16.msra.mxu0 %v759_v14  ;;  %730 = vmatpush1.bf16.msra.mxu1 %v759_v14 }
  0x24   : > { %442 = vmatprep.subr.bf16.mxu0 %v760_v15  ;;  %724 = vmatprep.subr.bf16.mxu1 %v760_v15 }
  0x27   : > { %443 = vmatpush1.bf16.msra.mxu0 %v762_v16  ;;  %731 = vmatpush1.bf16.msra.mxu1 %v762_v16 }
  0x28   : > { %704 = vmatprep.subr.msk.bf16.mxu0 %vm425_vm0, %v763_v17  ;;  %725 = vmatprep.subr.msk.bf16.mxu1 %vm425_vm0, %v763_v17 }
  0x2b   : > { %445 = vmatpush1.bf16.msra.mxu0 %v427_v19  ;;  %732 = vmatpush1.bf16.msra.mxu1 %v427_v19 }
  0x2e   : > { %705 = vmatmul.mubr.msk.bf16.vlgmr.msra.gmra.mrb[0].mxu0 %vm418_vm1, %v766_v20  ;;  %706 = vmatmul.mubr.msk.bf16.vlgmr.msra.gmra.mrb[0].mxu1 %vm418_vm1, %v767_v21 }
  0x87   : > { %v323_v22 = vpop.permute.xlu0 %322  ;;  %v333_v24 = vpop.permute.xlu1 %332 }
  0x8b   : > { %v328_v23 = vpop.permute.xlu0 %327  ;;  %v338_v45 = vpop.permute.xlu1 %337 }
 0x101   : > { %v466_v25 = vpop.f32.mrb[0].mxu0  ;;  %v476_v26 = vpop.f32.mrb[0].mxu1 }
 0x102   : > { %v467_v27 = vadd.f32 %v466_v25, %v323_v22  ;;  %v468_v28 = vpop.f32.mrb[1].mxu0  ;;  %v477_v29 = vadd.f32 %v476_v26, %v333_v24  ;;  %v478_v30 = vpop.f32.mrb[1].mxu1 }
 0x103   : > { %v469_v31 = vadd.f32 %v468_v28, %v323_v22  ;;  %v470_v32 = vpop.f32.mrb[2].mxu0  ;;  %v479_v33 = vadd.f32 %v478_v30, %v333_v24  ;;  %v480_v34 = vpop.f32.mrb[2].mxu1 }
 0x104   : > { %v707_v35 = vmul.f32 -1.442695, %v467_v27  ;;  %v471_v36 = vadd.f32 %v470_v32, %v328_v23  ;;  %v472_v37 = vpop.f32.mrb[3].mxu0  ;;  %v482_v38 = vpop.f32.mrb[3].mxu1  ;;  %v711_v42 = vmul.f32 -1.442695, %v477_v29  ;;  %v481_v46 = vadd.f32 %v480_v34, %v338_v45 }
 0x105   : > { %v708_v39 = vmul.f32 -1.442695, %v469_v31  ;;  %v473_v40 = vadd.f32 %v472_v37, %v328_v23  ;;  %v712_v44 = vmul.f32 -1.442695, %v479_v33  ;;  %v483_v47 = vadd.f32 %v482_v38, %v338_v45 }
 0x106   : > { %768 = vpow2.f32 %v707_v35  ;;  %v709_v41 = vmul.f32 -1.442695, %v471_v36 }
 0x107   : > { %770 = vpow2.f32 %v708_v39  ;;  %v710_v43 = vmul.f32 -1.442695, %v473_v40 }
 0x108   : > { %772 = vpow2.f32 %v709_v41 }
 0x109   : > { %774 = vpow2.f32 %v710_v43 }
 0x10a   : > { %776 = vpow2.f32 %v711_v42 }
 0x10b   : > { %778 = vpow2.f32 %v712_v44 }
 0x10c   : > { %780 = vtanh.f32 %v481_v46 }
 0x10d   : > { %782 = vtanh.f32 %v483_v47 }
 0x110   : > { %v769_v48 = vpop.eup %768 }
 0x111   : > { %v771_v49 = vpop.eup %770  ;;  %v491_v50 = vadd.f32 1.0, %v769_v48 }
 0x112   : > { %v773_v51 = vpop.eup %772  ;;  %v492_v52 = vadd.f32 1.0, %v771_v49 }
 0x113   : > { %v775_v53 = vpop.eup %774  ;;  %784 = vrcp.f32 %v491_v50  ;;  %v503_v54 = vadd.f32 1.0, %v773_v51 }
 0x114   : > { %v777_v55 = vpop.eup %776  ;;  %786 = vrcp.f32 %v492_v52  ;;  %v504_v56 = vadd.f32 1.0, %v775_v53 }
 0x115   : > { %v779_v57 = vpop.eup %778  ;;  %788 = vrcp.f32 %v503_v54  ;;  %v515_v58 = vadd.f32 1.0, %v777_v55 }
 0x116   : > { %790 = vrcp.f32 %v504_v56  ;;  %v516_v59 = vadd.f32 1.0, %v779_v57  ;;  %v781_v60 = vpop.eup %780 }
 0x117   : > { %792 = vrcp.f32 %v515_v58  ;;  %v783_v61 = vpop.eup %782 }
 0x118   : > { %794 = vrcp.f32 %v516_v59 }
 0x11d   : > { %v785_v62 = vpop.eup %784 }
 0x11e   : > { %v787_v0 = vpop.eup %786  ;;  %v527_v2 = vmul.f32 %v785_v62, %v781_v60 }
 0x11f   : > { %v789_v3 = vpop.eup %788  ;;  %v528_v4 = vmul.f32 %v787_v0, %v783_v61 }
 0x120   : > { %v791_v5 = vpop.eup %790  ;;  %v525_v6 = vmul.f32 %v789_v3, %v523_v63 }
 0x121   : > { %v793_v7 = vpop.eup %792  ;;  %v526_v8 = vmul.f32 %v791_v5, %v524_v1 }
 0x122   : > { %v795_v9 = vpop.eup %794  ;;  %539 = vst [vmem:[%s296_s22] sm:$0xff] %v793_v7  ;;  %v529_v10 = vadd.f32 %v527_v2, %v525_v6 }
 0x123   : > { %540 = vst [vmem:[%s296_s22 + $0x8] sm:$0xff] %v795_v9  ;;  %v530_v11 = vadd.f32 %v528_v4, %v526_v8 }
 0x124   : > { %796 = vtanh.f32 %v529_v10  ;;  %537 = vst [vmem:[%s291_s25] sm:$0xff] %v529_v10 }
 0x125   : > { %798 = vtanh.f32 %v530_v11  ;;  %538 = vst [vmem:[%s291_s25 + $0x8] sm:$0xff] %v530_v11 }
 0x12e   : > { %v797_v12 = vpop.eup %796 }
 0x12f   : > { %v799_v13 = vpop.eup %798  ;;  %v533_v14 = vmul.f32 %v797_v12, %v793_v7 }
 0x130   : > { %v534_v15 = vmul.f32 %v799_v13, %v795_v9 }
 0x131   : > { %535 = vst [vmem:[%s286_s28] sm:$0xff] %v533_v14 }
 0x132   : > { %536 = vst [vmem:[%s286_s28 + $0x8] sm:$0xff] %v534_v15 }
 0x133 PF: > { %s17_s21 = sadd.s32 1, %s806_s21  }
 0x134   : > { %p14_p4 = scmp.ge.s32.totalorder %s17_s21, 4  }
 0x136   :  { %16 = sbr.rel (!%p14_p4) target bundleno = 1 (0x1), region = 93 }

</bundles_post_ra>
